<compile_context>
chip_gen: v6e
topology: v6e:2x2x1
jax: 0.10.0
libtpu: 0.0.40
codegen_flags: <defaults>
</compile_context>

<pallas_src>
import jax
import jax.numpy as jnp
from jax import lax
from jax.experimental import pallas as pl
from jax.experimental.pallas import tpu as pltpu

_LANE = 128
_NEG_FILL = -10000000.0   # exact fill value used by torch masked_fill_


def _round_up(x, m):
    return (x + m - 1) // m * m


def _vmem_capacity_bytes():
    try:
        return int(pltpu.get_tpu_info().vmem_capacity_bytes)
    except Exception:
        return 64 * 1024 * 1024   # conservative (v7x per-TensorCore VMEM)


def _vmem_limit_bytes(cap):
    # Leave headroom below physical capacity: 96 MiB on 128 MiB parts
    # (v5e / v6e, as recommended), 48 MiB on v7x's 64 MiB.
    return int(min(cap * 3 // 4, 112 * 1024 * 1024))


def _pick_tile(L):
    # Prefer 256-aligned tiles (fills the 256x256 MXU on v6e/v7x), then 128
    # (v5e's 128x128 MXU), otherwise take the whole sequence.
    for t in (512, 256, 128):
        if L % t == 0:
            return t
    return L


# --------------------------------------------------------------------------
# Fused kernel: one batch element per grid step, both outputs in one pass.
# --------------------------------------------------------------------------
def _alignment_fused_kernel(a_ref, b_ref, ma_ref, mb_ref, fa_ref, fb_ref):
    # a_ref : (1, La, Hp) f32      b_ref : (1, Lb, Hp) f32
    # ma_ref: (1, La, 1)  f32      mb_ref: (1, 1, Lb)  f32 (lane-dense)
    a_bf = a_ref[0].astype(jnp.bfloat16)          # (La, Hp)
    b_bf = b_ref[0].astype(jnp.bfloat16)          # (Lb, Hp)

    # attn[i, j] = a_i . b_j  (contract on H; no b.T materialized -> no vxpose)
    attn = lax.dot_general(a_bf, b_bf, (((1,), (1,)), ((), ())),
                           preferred_element_type=jnp.float32)   # (La, Lb)

    # mask product == 0  ->  fill with -1e7 (matches masked_fill_ exactly)
    valid = (ma_ref[0] * mb_ref[0]) > 0.0          # (La,1)*(1,Lb) -> (La, Lb)
    attn = jnp.where(valid, attn, _NEG_FILL)

    # ---- path 1: softmax over Lb (torch dim=2) -> feature_a = attn_b @ b
    m_b = jnp.max(attn, axis=1, keepdims=True)
    e_b = jnp.exp(attn - m_b)
    p_b = e_b * pl.reciprocal(jnp.sum(e_b, axis=1, keepdims=True), approx=True)
    fa_ref[0] = jnp.dot(p_b.astype(jnp.bfloat16), b_bf,
                        preferred_element_type=jnp.float32)

    # ---- path 2: softmax over La (torch dim=1) -> feature_b = attn_a^T @ a
    m_a = jnp.max(attn, axis=0, keepdims=True)
    e_a = jnp.exp(attn - m_a)
    p_a = e_a * pl.reciprocal(jnp.sum(e_a, axis=0, keepdims=True), approx=True)
    # Contract over La (axis 0 of both operands) -> (Lb, Hp); no transpose.
    fb_ref[0] = lax.dot_general(p_a.astype(jnp.bfloat16), a_bf,
                                (((0,), (0,)), ((), ())),
                                preferred_element_type=jnp.float32)


def _fused_call(a, b, ma_col, mb_row, vmem_limit):
    B, La, Hp = a.shape
    _, Lb, _ = b.shape
    cost = pl.CostEstimate(
        flops=2 * B * La * Lb * Hp * 3,
        transcendentals=2 * B * La * Lb,
        bytes_accessed=4 * B * (2 * (La + Lb) * Hp + La + Lb),
    )
    grid_spec = pltpu.PrefetchScalarGridSpec(
        num_scalar_prefetch=0,
        grid=(B,),
        in_specs=[
            pl.BlockSpec((1, La, Hp), lambda i: (i, 0, 0)),
            pl.BlockSpec((1, Lb, Hp), lambda i: (i, 0, 0)),
            pl.BlockSpec((1, La, 1), lambda i: (i, 0, 0)),
            pl.BlockSpec((1, 1, Lb), lambda i: (i, 0, 0)),
        ],
        out_specs=[
            pl.BlockSpec((1, La, Hp), lambda i: (i, 0, 0)),
            pl.BlockSpec((1, Lb, Hp), lambda i: (i, 0, 0)),
        ],
    )
    return pl.pallas_call(
        _alignment_fused_kernel,
        out_shape=(jax.ShapeDtypeStruct((B, La, Hp), jnp.float32),
                   jax.ShapeDtypeStruct((B, Lb, Hp), jnp.float32)),
        grid_spec=grid_spec,
        compiler_params=pltpu.CompilerParams(
            dimension_semantics=("parallel",),
            vmem_limit_bytes=vmem_limit),
        cost_estimate=cost,
    )(a, b, ma_col, mb_row)


# --------------------------------------------------------------------------
# Tiled kernel: symmetric masked cross-attention with identity values.
#   feature_a = cross(q=a, k=b, qmask=mask_a, kmask=mask_b)
#   feature_b = cross(q=b, k=a, qmask=mask_b, kmask=mask_a)
# --------------------------------------------------------------------------
def _cross_attend_kernel(q_ref, k_ref, qm_ref, km_ref, o_ref):
    # q_ref : (1, tQ, Hp)    query tile
    # k_ref : (1, Lk, Hp)    full key/value sequence (same block across tiles)
    # qm_ref: (1, tQ, 1)     query mask (column)
    # km_ref: (1, 1, Lk)     key mask (lane-dense row)
    q_bf = q_ref[0].astype(jnp.bfloat16)
    k_bf = k_ref[0].astype(jnp.bfloat16)

    s = lax.dot_general(q_bf, k_bf, (((1,), (1,)), ((), ())),
                        preferred_element_type=jnp.float32)       # (tQ, Lk)
    valid = (qm_ref[0] * km_ref[0]) > 0.0
    s = jnp.where(valid, s, _NEG_FILL)

    m = jnp.max(s, axis=1, keepdims=True)
    e = jnp.exp(s - m)
    p = e * pl.reciprocal(jnp.sum(e, axis=1, keepdims=True), approx=True)
    o_ref[0] = jnp.dot(p.astype(jnp.bfloat16), k_bf,
                       preferred_element_type=jnp.float32)


def _cross_attend(q, k, qm_col, km_row, vmem_limit):
    B, Lq, Hp = q.shape
    _, Lk, _ = k.shape
    tile = _pick_tile(Lq)
    cost = pl.CostEstimate(
        flops=2 * B * Lq * Lk * Hp * 2,
        transcendentals=B * Lq * Lk,
        bytes_accessed=4 * B * (2 * Lq * Hp + Lk * Hp + Lq + Lk),
    )
    grid_spec = pltpu.PrefetchScalarGridSpec(
        num_scalar_prefetch=0,
        grid=(B, Lq // tile),
        in_specs=[
            pl.BlockSpec((1, tile, Hp), lambda b, t: (b, t, 0)),
            pl.BlockSpec((1, Lk, Hp), lambda b, t: (b, 0, 0)),
            pl.BlockSpec((1, tile, 1), lambda b, t: (b, t, 0)),
            pl.BlockSpec((1, 1, Lk), lambda b, t: (b, 0, 0)),
        ],
        out_specs=pl.BlockSpec((1, tile, Hp), lambda b, t: (b, t, 0)),
    )
    return pl.pallas_call(
        _cross_attend_kernel,
        out_shape=jax.ShapeDtypeStruct((B, Lq, Hp), jnp.float32),
        grid_spec=grid_spec,
        compiler_params=pltpu.CompilerParams(
            dimension_semantics=("parallel", "parallel"),
            vmem_limit_bytes=vmem_limit),
        cost_estimate=cost,
    )(q, k, qm_col, km_row)


# --------------------------------------------------------------------------
# Public wrapper
# --------------------------------------------------------------------------
def alignment(a, b, mask_a, mask_b, *, mode=None):
    """a: (B, La, H), b: (B, Lb, H), mask_a: (B, La, 1), mask_b: (B, Lb, 1).

    Returns (feature_a (B, La, H), feature_b (B, Lb, H)).
    """
    B, La, H = a.shape
    _, Lb, _ = b.shape

    # Lane-dense hidden dimension (multiple of 128); zero padding is exact
    # for the dot products and the padded output columns are sliced off.
    Hp = max(_LANE, _round_up(H, _LANE))
    a32 = a.astype(jnp.float32)
    b32 = b.astype(jnp.float32)
    if Hp != H:
        a32 = jnp.pad(a32, ((0, 0), (0, 0), (0, Hp - H)))
        b32 = jnp.pad(b32, ((0, 0), (0, 0), (0, Hp - H)))

    ma_col = mask_a.astype(jnp.float32).reshape(B, La, 1)
    mb_col = mask_b.astype(jnp.float32).reshape(B, Lb, 1)
    ma_row = ma_col.reshape(B, 1, La)   # lane-dense layouts: no in-kernel
    mb_row = mb_col.reshape(B, 1, Lb)   # sublane->lane transpose needed.

    vmem_cap = _vmem_capacity_bytes()
    vmem_limit = _vmem_limit_bytes(vmem_cap)

    if mode is None:
        # Rough per-grid-step VMEM of the fused kernel: double-buffered
        # input+output blocks plus ~3 live (La, Lb) f32 intermediates.
        fused_bytes = 4 * (4 * (La + Lb) * Hp + 3 * La * Lb)
        mode = "fused" if fused_bytes <= (vmem_cap * 11) // 20 else "tiled"

    if mode == "fused":
        fa_p, fb_p = _fused_call(a32, b32, ma_col, mb_row, vmem_limit)
    else:
        fa_p = _cross_attend(a32, b32, ma_col, mb_row, vmem_limit)
        fb_p = _cross_attend(b32, a32, mb_col, ma_row, vmem_limit)

    return fa_p[..., :H].astype(a.dtype), fb_p[..., :H].astype(a.dtype)


# --------------------------------------------------------------------------
# Reference (pure JAX) and self-test
# --------------------------------------------------------------------------
def _reference(a, b, mask_a, mask_b, matmul_dtype=jnp.float32):
    am = a.astype(matmul_dtype)
    bm = b.astype(matmul_dtype)
    attn = jnp.einsum("bld,bmd->blm", am, bm,
                      preferred_element_type=jnp.float32)
    mask = (mask_a.astype(jnp.float32)
            * jnp.swapaxes(mask_b.astype(jnp.float32), 1, 2)) > 0
    attn = jnp.where(mask, attn, _NEG_FILL)
    attn_a = jax.nn.softmax(attn, axis=1)
    attn_b = jax.nn.softmax(attn, axis=2)
    feature_b = jnp.einsum("blm,bld->bmd", attn_a.astype(matmul_dtype), am,
                           preferred_element_type=jnp.float32)
    feature_a = jnp.einsum("blm,bmd->bld", attn_b.astype(matmul_dtype), bm,
                           preferred_element_type=jnp.float32)
    return feature_a, feature_b


if __name__ == "__main__":
    key = jax.random.PRNGKey(0)
    B, La, Lb, H = 2, 8, 8, 32

    k1, k2 = jax.random.split(key)
    a = jax.random.normal(k1, (B, La, H), dtype=jnp.float32)
    b = jax.random.normal(k2, (B, Lb, H), dtype=jnp.float32)

    # Deterministic masks: last positions of some sequences masked out.
    mask_a = jnp.ones((B, La, 1), dtype=jnp.float32).at[0, La - 2:, 0].set(0.0)
    mask_b = jnp.ones((B, Lb, 1), dtype=jnp.float32).at[1, Lb - 3:, 0].set(0.0)

    # References: bf16-quantized matmuls (mirrors the kernel's MXU inputs) for
    # a tight check, plus the exact f32 reference for a semantic sanity check.
    qa, qb = _reference(a, b, mask_a, mask_b, matmul_dtype=jnp.bfloat16)
    ra, rb = _reference(a, b, mask_a, mask_b, matmul_dtype=jnp.float32)

    for mode in ("fused", "tiled"):
        feat_a, feat_b = alignment(a, b, mask_a, mask_b, mode=mode)
        jax.block_until_ready((feat_a, feat_b))
        assert feat_a.shape == (B, La, H) and feat_b.shape == (B, Lb, H)
        assert jnp.allclose(feat_a, qa, atol=2e-2, rtol=2e-2), mode
        assert jnp.allclose(feat_b, qb, atol=2e-2, rtol=2e-2), mode
        # bf16 MXU inputs -> small, bounded deviation from the exact f32 math.
        assert jnp.allclose(feat_a, ra, atol=1e-1, rtol=1e-1), mode
        assert jnp.allclose(feat_b, rb, atol=1e-1, rtol=1e-1), mode

    # Also exercise the automatic (capacity-based) mode selection once.
    feat_a, feat_b = alignment(a, b, mask_a, mask_b)
    jax.block_until_ready((feat_a, feat_b))
    assert jnp.allclose(feat_a, qa, atol=2e-2, rtol=2e-2)
    assert jnp.allclose(feat_b, qb, atol=2e-2, rtol=2e-2)

    print("KERNEL_OK")
</pallas_src>

<mosaic_0001>
module attributes {stable_mosaic.version = 11 : i64} {
  func.func @_alignment_fused_kernel(%arg0: i32, %arg1: memref<1x8x128xf32, #tpu.memory_space<vmem>>, %arg2: memref<1x8x128xf32, #tpu.memory_space<vmem>>, %arg3: memref<1x8x1xf32, #tpu.memory_space<vmem>>, %arg4: memref<1x1x8xf32, #tpu.memory_space<vmem>>, %arg5: memref<1x8x128xf32, #tpu.memory_space<vmem>>, %arg6: memref<1x8x128xf32, #tpu.memory_space<vmem>>) attributes {dimension_semantics = [#tpu.dimension_semantics<parallel>], iteration_bounds = array<i64: 2>, scalar_prefetch = 0 : i64, scratch_operands = 0 : i64, tpu.core_type = #tpu.core_type<tc>, window_params = [{transform_indices = @transform_0, window_bounds = array<i64: 1, 8, 128>}, {transform_indices = @transform_1, window_bounds = array<i64: 1, 8, 128>}, {transform_indices = @transform_2, window_bounds = array<i64: 1, 8, 1>}, {transform_indices = @transform_3, window_bounds = array<i64: 1, 1, 8>}, {transform_indices = @transform_4, window_bounds = array<i64: 1, 8, 128>}, {transform_indices = @transform_5, window_bounds = array<i64: 1, 8, 128>}]} {
    %c0 = arith.constant 0 : index
    %c0_0 = arith.constant 0 : index
    %c0_1 = arith.constant 0 : index
    %0 = vector.load %arg1[%c0, %c0_0, %c0_1] : memref<1x8x128xf32, #tpu.memory_space<vmem>>, vector<1x8x128xf32>
    %1 = vector.shape_cast %0 : vector<1x8x128xf32> to vector<8x128xf32>
    %2 = arith.truncf %1 : vector<8x128xf32> to vector<8x128xbf16>
    %c0_2 = arith.constant 0 : index
    %c0_3 = arith.constant 0 : index
    %c0_4 = arith.constant 0 : index
    %3 = vector.load %arg2[%c0_2, %c0_3, %c0_4] : memref<1x8x128xf32, #tpu.memory_space<vmem>>, vector<1x8x128xf32>
    %4 = vector.shape_cast %3 : vector<1x8x128xf32> to vector<8x128xf32>
    %5 = arith.truncf %4 : vector<8x128xf32> to vector<8x128xbf16>
    %cst = arith.constant dense<0.000000e+00> : vector<8x8xf32>
    %6 = tpu.matmul %2, %5, %cst {dimension_numbers = #tpu.dot_dimension_numbers<[1], [1], [0], [0], [0, 0, 1, 0], [], []>} : vector<8x128xbf16>, vector<8x128xbf16>, vector<8x8xf32> -> vector<8x8xf32>
    %c0_5 = arith.constant 0 : index
    %c0_6 = arith.constant 0 : index
    %c0_7 = arith.constant 0 : index
    %7 = vector.load %arg3[%c0_5, %c0_6, %c0_7] : memref<1x8x1xf32, #tpu.memory_space<vmem>>, vector<1x8x1xf32>
    %8 = vector.shape_cast %7 : vector<1x8x1xf32> to vector<8x1xf32>
    %c0_8 = arith.constant 0 : index
    %c0_9 = arith.constant 0 : index
    %c0_10 = arith.constant 0 : index
    %9 = vector.load %arg4[%c0_8, %c0_9, %c0_10] : memref<1x1x8xf32, #tpu.memory_space<vmem>>, vector<1x1x8xf32>
    %10 = vector.shape_cast %9 : vector<1x1x8xf32> to vector<1x8xf32>
    %11 = vector.broadcast %8 : vector<8x1xf32> to vector<8x8xf32>
    %12 = vector.broadcast %10 : vector<1x8xf32> to vector<8x8xf32>
    %13 = arith.mulf %11, %12 : vector<8x8xf32>
    %cst_11 = arith.constant 0.000000e+00 : f32
    %14 = vector.broadcast %cst_11 : f32 to vector<8x8xf32>
    %15 = arith.cmpf ogt, %13, %14 : vector<8x8xf32>
    %cst_12 = arith.constant -1.000000e+07 : f32
    %16 = vector.broadcast %cst_12 : f32 to vector<8x8xf32>
    %17 = arith.select %15, %6, %16 : vector<8x8xi1>, vector<8x8xf32>
    %cst_13 = arith.constant dense<0xFF800000> : vector<8xf32>
    %18 = vector.multi_reduction <maximumf>, %17, %cst_13 [1] : vector<8x8xf32> to vector<8xf32>
    %19 = vector.shape_cast %18 : vector<8xf32> to vector<8x1xf32>
    %20 = vector.broadcast %19 : vector<8x1xf32> to vector<8x8xf32>
    %21 = arith.subf %17, %20 : vector<8x8xf32>
    %22 = math.exp %21 : vector<8x8xf32>
    %cst_14 = arith.constant dense<0.000000e+00> : vector<8xf32>
    %23 = vector.multi_reduction <add>, %22, %cst_14 [1] : vector<8x8xf32> to vector<8xf32>
    %24 = vector.shape_cast %23 : vector<8xf32> to vector<8x1xf32>
    %25 = tpu.reciprocal %24 {approx = true} : vector<8x1xf32> -> vector<8x1xf32>
    %26 = vector.broadcast %25 : vector<8x1xf32> to vector<8x8xf32>
    %27 = arith.mulf %22, %26 : vector<8x8xf32>
    %28 = arith.truncf %27 : vector<8x8xf32> to vector<8x8xbf16>
    %cst_15 = arith.constant dense<0.000000e+00> : vector<8x128xf32>
    %29 = tpu.matmul %28, %5, %cst_15 {dimension_numbers = #tpu.dot_dimension_numbers<[1], [0], [0], [1], [0, 0, 1, 1], [], []>} : vector<8x8xbf16>, vector<8x128xbf16>, vector<8x128xf32> -> vector<8x128xf32>
    %c0_16 = arith.constant 0 : index
    %c0_17 = arith.constant 0 : index
    %c0_18 = arith.constant 0 : index
    %30 = vector.load %arg5[%c0_16, %c0_17, %c0_18] : memref<1x8x128xf32, #tpu.memory_space<vmem>>, vector<1x8x128xf32>
    %31 = vector.shape_cast %30 : vector<1x8x128xf32> to vector<8x128xf32>
    %32 = vector.shape_cast %29 : vector<8x128xf32> to vector<1x8x128xf32>
    tpu.vector_store %arg5[%c0_16, %c0_17, %c0_18], %32 {strides = array<i32>} : memref<1x8x128xf32, #tpu.memory_space<vmem>>, vector<1x8x128xf32>,
    %cst_19 = arith.constant dense<0xFF800000> : vector<8xf32>
    %33 = vector.multi_reduction <maximumf>, %17, %cst_19 [0] : vector<8x8xf32> to vector<8xf32>
    %34 = vector.shape_cast %33 : vector<8xf32> to vector<1x8xf32>
    %35 = vector.broadcast %34 : vector<1x8xf32> to vector<8x8xf32>
    %36 = arith.subf %17, %35 : vector<8x8xf32>
    %37 = math.exp %36 : vector<8x8xf32>
    %cst_20 = arith.constant dense<0.000000e+00> : vector<8xf32>
    %38 = vector.multi_reduction <add>, %37, %cst_20 [0] : vector<8x8xf32> to vector<8xf32>
    %39 = vector.shape_cast %38 : vector<8xf32> to vector<1x8xf32>
    %40 = tpu.reciprocal %39 {approx = true} : vector<1x8xf32> -> vector<1x8xf32>
    %41 = vector.broadcast %40 : vector<1x8xf32> to vector<8x8xf32>
    %42 = arith.mulf %37, %41 : vector<8x8xf32>
    %43 = arith.truncf %42 : vector<8x8xf32> to vector<8x8xbf16>
    %cst_21 = arith.constant dense<0.000000e+00> : vector<8x128xf32>
    %44 = tpu.matmul %43, %2, %cst_21 {dimension_numbers = #tpu.dot_dimension_numbers<[0], [0], [1], [1], [0, 1, 1, 1], [], []>} : vector<8x8xbf16>, vector<8x128xbf16>, vector<8x128xf32> -> vector<8x128xf32>
    %c0_22 = arith.constant 0 : index
    %c0_23 = arith.constant 0 : index
    %c0_24 = arith.constant 0 : index
    %45 = vector.load %arg6[%c0_22, %c0_23, %c0_24] : memref<1x8x128xf32, #tpu.memory_space<vmem>>, vector<1x8x128xf32>
    %46 = vector.shape_cast %45 : vector<1x8x128xf32> to vector<8x128xf32>
    %47 = vector.shape_cast %44 : vector<8x128xf32> to vector<1x8x128xf32>
    tpu.vector_store %arg6[%c0_22, %c0_23, %c0_24], %47 {strides = array<i32>} : memref<1x8x128xf32, #tpu.memory_space<vmem>>, vector<1x8x128xf32>,
    return
  }
  func.func @transform_0(%arg0: i32) -> (i32, i32, i32) {
    %c0_i32 = arith.constant 0 : i32
    %c0_i32_0 = arith.constant 0 : i32
    %c0_i32_1 = arith.constant 0 : i32
    return %arg0, %c0_i32, %c0_i32_0 : i32, i32, i32
  }
  func.func @transform_1(%arg0: i32) -> (i32, i32, i32) {
    %c0_i32 = arith.constant 0 : i32
    %c0_i32_0 = arith.constant 0 : i32
    %c0_i32_1 = arith.constant 0 : i32
    return %arg0, %c0_i32, %c0_i32_0 : i32, i32, i32
  }
  func.func @transform_2(%arg0: i32) -> (i32, i32, i32) {
    %c0_i32 = arith.constant 0 : i32
    %c0_i32_0 = arith.constant 0 : i32
    %c0_i32_1 = arith.constant 0 : i32
    return %arg0, %c0_i32, %c0_i32_0 : i32, i32, i32
  }
  func.func @transform_3(%arg0: i32) -> (i32, i32, i32) {
    %c0_i32 = arith.constant 0 : i32
    %c0_i32_0 = arith.constant 0 : i32
    %c0_i32_1 = arith.constant 0 : i32
    return %arg0, %c0_i32, %c0_i32_0 : i32, i32, i32
  }
  func.func @transform_4(%arg0: i32) -> (i32, i32, i32) {
    %c0_i32 = arith.constant 0 : i32
    %c0_i32_0 = arith.constant 0 : i32
    %c0_i32_1 = arith.constant 0 : i32
    return %arg0, %c0_i32, %c0_i32_0 : i32, i32, i32
  }
  func.func @transform_5(%arg0: i32) -> (i32, i32, i32) {
    %c0_i32 = arith.constant 0 : i32
    %c0_i32_0 = arith.constant 0 : i32
    %c0_i32_1 = arith.constant 0 : i32
    return %arg0, %c0_i32, %c0_i32_0 : i32, i32, i32
  }
}

</mosaic_0001>

<bundles_post_ra>
// kernel: tpu_custom_call.1
= control target key start
LH: loop header
LB: loop body
LE: loop exit
PB: predicated region body
PF: predicated region fallthrough
CT: control target
= control target key end

     0   :  { %11 = vsyncpa [#allocation3], 0  ;;  %s1154_s0 = inlined_call_operand.vmem [shape: f32[2,8,128], index: 0, kind: input, shape index: {}]   ;;  %s1155_s1 = inlined_call_operand.hbm [shape: f32[2,8,128], index: 1, kind: input, shape index: {}]   ;;  %s1156_s2 = inlined_call_operand.vmem [shape: f32[2,8,1], index: 2, kind: input, shape index: {}]   ;;  %s1157_s3 = inlined_call_operand.vmem [shape: f32[2,1,8], index: 3, kind: input, shape index: {}]   ;;  %s1158_s4 = inlined_call_operand.hbm [shape: f32[2,8,128], index: 4, kind: output, shape index: {0}]   ;;  %s1159_s5 = inlined_call_operand.hbm [shape: f32[2,8,128], index: 5, kind: output, shape index: {1}]  }
   0x1   :  { %13 = vsyncpa [#allocation3 + $0x1], 0 }
   0x2   :  { %14 = vsyncpa [#allocation4], 0 }
   0x3   :  { %16 = vsyncpa [#allocation4 + $0x1], 0 }
   0x4   :  { %17 = vsyncpa [#allocation7], 0 }
   0x5   :  { %19 = vsyncpa [#allocation7 + $0x1], 0  ;;  %s937_s18 = smov 0   ;;  %s939_s19 = smov 0  }
   0x6   :  { %s941_s20 = smov 0   ;;  %s943_s21 = smov 0  }
   0x7 LB: > { %s958_s22 = sadd.s32 4294967295, %s899_s21   ;;  %s670_s23 = sadd.s32 4294967294, %s899_s21   ;;  %s899_s21 = sphi %s943_s21, %s1176_s21   ;;  %s895_s20 = sphi %s941_s20, %s1175_s20   ;;  %s891_s19 = sphi %s939_s19, %s1174_s19   ;;  %s887_s18 = sphi %s937_s18, %s1173_s18  }
   0x8   : > { %s962_s24 = sadd.s32 1, %s899_s21   ;;  %s58_s25 = sadd.s32 1, %s895_s20 }
   0x9   : > { %s55_s26 = ssub.s32 %s899_s21, %s962_s24  ;;  %p65_p0 = scmp.ne.s32.totalorder %s895_s20, %s891_s19 }
   0xa   : > { %p56_p1 = scmp.eq.s32.totalorder %s55_s26, 0  ;;  %p66_p2 = scmp.eq.s32.totalorder %s899_s21, 0 }
   0xb   : > { %p71_p3 = scmp.ne.s32.totalorder %s891_s19, %s887_s18  ;;  %p72_p4 = scmp.eq.s32.totalorder %s958_s22, 0 }
   0xc   : > { %s974_s27 = scalar_select %p56_p1, %s895_s20, %s58_s25  }
   0xd   : > { %p976_p5 = por %p66_p2, %p65_p0  ;;  %p980_p6 = por %p72_p4, %p71_p3 }
   0xe   : > { %p147_p7 = scmp.eq.s32.totalorder %s958_s22, 1  ;;  %p153_p8 = scmp.eq.s32.totalorder %s670_s23, 1 }
   0xf   : > { %s1163_s29 = scalar_select %p980_p6, 1, 0 }
  0x10   : > { %p731_p10 = scmp.lt.s32.totalorder %s899_s21, 2  ;;  %p987_p11 = por %p147_p7, %p65_p0 }
  0x11   : > { %p991_p12 = por %p153_p8, %p71_p3  ;;  %s206_s7 = sand.u32 1, %s895_s20  }
  0x12   : > { %s1164_s30 = scalar_select %p987_p11, 1, 0 }
  0x13   : > { %s1165_s6 = scalar_select %p991_p12, 1, 0 }
  0x14   : > { %s674_s8 = sshll.u32 %s899_s21, 7  ;;  %s673_s9 = sshll.u32 %s206_s7, 3 }
  0x15   : > { %s1000_s12 = scalar_lea.hbm %s1155_s1, %s674_s8  ;;  %s210_s13 = scalar_lea.vmem [#allocation2], %s673_s9 }
  0x16   : > { %s217_s14 = sshll.u32 %s210_s13, 4  ;;  %p1004_p13 = pnand %p731_p10, %p976_p5  ;;  %s1008_s14 = int_to_ptr.vmem [resolvable:$true] %s217_s14 }
  0x17   : > { %s207_s16 = scalar_lea.sflag [#allocation3], %s206_s7  ;;  %s777_s17 = scalar_lea.hbm %s1000_s12, 128 }
  0x18   : > { %p778_p2 = scmp.ne.s32.totalorder %s1000_s12, %s777_s17  ;;  %p779_p3 = pneg %p1004_p13 }
  0x19   : > { %s782_s26 = scalar_lea.hbm %s1155_s1, 256  ;;  %p783_p5 = scmp.lt.s32.totalorder %s1000_s12, %s1155_s1 }
  0x1a   : > { %p780_p4 = pnand %p779_p3, %p778_p2  ;;  %p784_p8 = scmp.lt.s32.totalorder %s782_s26, %s777_s17 }
  0x1c   : > { %p781_p7 = pneg %p780_p4  ;;  %p785_p10 = por %p784_p8, %p783_p5 }
  0x1e   : > { %p786_p9 = pnand %p785_p10, %p781_p7 }
  0x20   : > { %789 = shalt.err (!%p786_p9)
}
  0x21   : > { %s790_s7 = scalar_lea.vmem %s1008_s14, 128  ;;  %s901_s9 = smov [#allocation2]  }
  0x22   : > { %p791_p0 = scmp.ne.s32.totalorder %s1008_s14, %s790_s7  ;;  %s795_s10 = sshll.u32 %s901_s9, 4  ;;  %s796_s10 = int_to_ptr.vmem [resolvable:$false] %s795_s10 }
  0x23   : > { %s797_s11 = scalar_lea.vmem %s796_s10, 256  ;;  %p798_p4 = scmp.lt.s32.totalorder %s1008_s14, %s796_s10 }
  0x24   : > { %p793_p1 = pnand %p791_p0, %p779_p3  ;;  %p799_p12 = scmp.lt.s32.totalorder %s797_s11, %s790_s7 }
  0x26   : > { %p794_p2 = pneg %p793_p1  ;;  %p800_p11 = por %p799_p12, %p798_p4 }
  0x28   : > { %p801_p6 = pnand %p800_p11, %p794_p2 }
  0x2a   : > { %804 = shalt.err (!%p801_p6)
}
  0x2b   : > { %723 = dma.hbm_to_vmem [thread:$0]  (!%p1004_p13), %s1000_s12, 128, %s1008_s14, %s207_s16  }
  0x2c   : > { %p1167_p9 = scmp.lt.s32.totalorder %s899_s21, 3  ;;  %p1168_p7 = scmp.ge.s32.totalorder %s899_s21, 1 }
  0x2e   : > { %p236_p0 = pnand %p1168_p7, %p1167_p9 }
  0x2f   : > { %s1035_s13 = sand.u32 (!%p236_p0), 1, %s891_s19   ;;  %p1169_p6 = scmp.ne.s32.totalorder (!%p236_p0), %s1163_s29, 0 }
  0x30   : > { %239 = sbr.rel (%p236_p0) target bundleno = 804 (0x324), region = 36  ;;  %s1038_s17 = sshll.u32 (!%p236_p0), %s1035_s13, 3 }
  0x31   : > { %s242_s23 = scalar_lea.sflag (!%p236_p0), [#allocation3], %s1035_s13  ;;  %s245_s15 = scalar_lea.vmem (!%p236_p0), [#allocation2], %s1038_s17 }
  0x35   : > { %874 = dma.done.wait (%p1169_p6), %s242_s23, 128  }
  0x36   : > { %876 = vsyncadd (%p1169_p6), %s242_s23, 4294967168  ;;  %p288_p11 = scmp.lt.s32.totalorder %s958_s22, 1  ;;  %v902_v0 = vmov 0.0   ;;  %vm903_vm0 = vmmov 0   ;;  %v904_v1 = vmov 0   ;;  %v302_v2 = vld [vmem:[%s245_s15] sm:$0xff] }
  0x37   : > { %696 = vmatprep.subr.bf16.mxu0 %v902_v0  ;;  %698 = vmatprep.mubr.msk.bf16.mxu0 %vm903_vm0, %v902_v0  ;;  %v303_v4 = vpack.c.bf16 %v302_v2, %v302_v2  ;;  %vm360_vm2 = vcmask 64512   ;;  %vm376_vm3 = vcmask 1043456   ;;  %s280_s11 = scalar_lea.vmem [#allocation5], %s1038_s17  ;;  %s686_s15 = sshll.u32 %s958_s22, 7 }
  0x38   : > { %s289_s12 = scalar_select %p288_p11, %s958_s22, 1  ;;  %768 = vset.pattern.permute.xlu0 %v904_v1  ;;  %702 = vmatprep.subr.bf16.mxu1 %v902_v0 }
  0x39   : > { %704 = vmatprep.mubr.msk.bf16.mxu1 %vm903_vm0, %v902_v0  ;;  %697 = vmatpush3.bf16.xpose.msra.mxu0 %v303_v4  ;;  %v378_v35 = vsel %vm376_vm3, %v303_v4, 0  ;;  %s522_s23 = sshll.u32 %s280_s11, 4  ;;  %s1082_s14 = scalar_lea.hbm %s1158_s4, %s686_s15  ;;  %s1075_s23 = int_to_ptr.vmem [resolvable:$true] %s522_s23 }
  0x3a   : > { %s679_s29 = sshll.u32 %s289_s12, 3  ;;  %s298_s10 = scalar_lea.vmem %s1157_s3, %s289_s12  ;;  %703 = vmatpush3.bf16.msra.mxu1 %v378_v35 }
  0x3b   : > { %s295_s25 = scalar_lea.vmem %s1156_s2, %s679_s29  ;;  %s291_s8 = scalar_lea.vmem %s1154_s0, %s679_s29  ;;  %v681_v7 = vld [vmem:[%s298_s10] ss:$0 sm:$0xff]  ;;  %708 = vmatprep.subr.bf16.mxu1 %v902_v0 }
  0x3c   : > { %v344_v3 = vld [vmem:[%s295_s25] sm:$0xff]  ;;  %s504_s16 = scalar_lea.sflag [#allocation4], %s1035_s13  ;;  %s805_s25 = scalar_lea.vmem %s1075_s23, 128 }
  0x3d   : > { %348 = vperm.xlu0 %768, %v344_v3   ;;  %v300_v5 = vld [vmem:[%s291_s8] sm:$0xff]  ;;  %p806_p12 = scmp.ne.s32.totalorder %s1075_s23, %s805_s25  ;;  %p1170_p13 = scmp.ne.s32.totalorder %s1164_s30, 0 }
  0x3e   : > { %v301_v6 = vpack.c.bf16 %v300_v5, %v300_v5  ;;  %s905_s26 = smov [#allocation5]  }
  0x3f   : > { %p807_p1 = pnand %p806_p12, %p1170_p13  ;;  %s809_s28 = sshll.u32 %s905_s26, 4  ;;  %s810_s28 = int_to_ptr.vmem [resolvable:$false] %s809_s28 }
  0x40   : > { %699 = vmatmul.mubr.bf16.vlgmr.msra.gmra.mxu0 %v301_v6  ;;  %v460_v44 = vsel %vm376_vm3, %v301_v6, 0  ;;  %s811_s8 = scalar_lea.vmem %s810_s28, 256  ;;  %p812_p5 = scmp.lt.s32.totalorder %s1075_s23, %s810_s28 }
  0x41   : > { %p808_p3 = pneg %p807_p1  ;;  %p813_p8 = scmp.lt.s32.totalorder %s811_s8, %s805_s25 }
  0x43   : > { %p814_p10 = por %p813_p8, %p812_p5 }
  0x45   : > { %p815_p2 = pnand %p814_p10, %p808_p3 }
  0xb8   : > { %v349_v8 = vpop.permute.xlu0 %348 }
  0xb9   : > { %v357_v9 = vmul.f32 %v681_v7, %v349_v8 }
  0xbb   : > { %vm358_vm1 = vcmp.gt.f32.partialorder %v357_v9, 0.0 }
 0x100   : > { %v338_v10 = vpop.f32.mrf.mxu0 }
 0x101   : > { %v359_v11 = vsel %vm358_vm1, %v338_v10, -10000000.0 }
 0x102   : > { %v700_v12 = vpop.f32.mrf.mxu0  ;;  %v361_v13 = vsel %vm360_vm2, %v359_v11, -inf }
 0x103   : > { %362 = vmax.xlane.f32.xlu0 %v361_v13  ;;  %v421_v16 = vrot.slane %v361_v13, 4 }
 0x104   : > { %v341_v14 = vpop.f32.mrf.mxu0 }
 0x105   : > { %v422_v17 = vmax.f32 %v361_v13, %v421_v16 }
 0x106   : > { %v701_v15 = vpop.f32.mrf.mxu0 }
 0x107   : > { %v423_v18 = vrot.slane %v422_v17, 2 }
 0x109   : > { %v424_v19 = vmax.f32 %v422_v17, %v423_v18 }
 0x10b   : > { %v425_v20 = vrot.slane %v424_v19, 1 }
 0x10d   : > { %v426_v21 = vmax.f32 %v424_v19, %v425_v20 }
 0x10f   : > { %v427_v22 = vsub.f32 %v359_v11, %v426_v21 }
 0x111   : > { %v428_v23 = vmul.f32 1.442695, %v427_v22 }
 0x113   : > { %769 = vpow2.f32 %v428_v23 }
 0x120   : > { %v770_v27 = vpop.eup %769 }
 0x121   : > { %v430_v28 = vsel %vm360_vm2, %v770_v27, 0.0 }
 0x122   : > { %v431_v30 = vrot.slane %v430_v28, 4 }
 0x124   : > { %v432_v32 = vadd.f32 %v431_v30, %v430_v28 }
 0x126   : > { %v433_v33 = vrot.slane %v432_v32, 2 }
 0x128   : > { %v434_v34 = vadd.f32 %v433_v33, %v432_v32 }
 0x12a   : > { %v435_v36 = vrot.slane %v434_v34, 1 }
 0x12c   : > { %v436_v37 = vadd.f32 %v435_v36, %v434_v34 }
 0x18c   : > { %v363_v24 = vpop.xlane.xlu0 %362 }
 0x18d   : > { %v364_v25 = vsub.f32 %v359_v11, %v363_v24 }
 0x18f   : > { %v365_v26 = vmul.f32 1.442695, %v364_v25 }
 0x191   : > { %771 = vpow2.f32 %v365_v26 }
 0x192   : > { %773 = vrcp.f32 %v436_v37 }
 0x19e   : > { %v772_v29 = vpop.eup %771 }
 0x19f   : > { %v367_v31 = vsel %vm360_vm2, %v772_v29, 0.0  ;;  %v774_v38 = vpop.eup %773 }
 0x1a0   : > { %368 = vadd.xlane.f32.xlu1 %v367_v31  ;;  %v438_v39 = vmul.f32 %v774_v38, %v770_v27 }
 0x1a2   : > { %v439_v40 = vpack.c.bf16 %v438_v39, %v438_v39 }
 0x1cd   : > { %440 = vxpose.xlu1.c.b16.start.end [1/1] (short) (narrow) %v439_v40, 16 }
 0x229   : > { %v369_v41 = vpop.xlane.xlu1 %368 }
 0x22a   : > { %775 = vrcp.f32 %v369_v41 }
 0x22f   : > { %v448_v46 = vpop.trf.xlu1 }
 0x237   : > { %v776_v42 = vpop.eup %775 }
 0x238   : > { %v371_v43 = vmul.f32 %v776_v42, %v772_v29 }
 0x23a   : > { %v372_v45 = vpack.c.bf16 %v371_v43, %v371_v43 }
 0x23c   : > { %705 = vmatmul.mubr.msk.bf16.vlgmr.msra.gmra.mxu1 %vm360_vm2, %v372_v45 }
 0x23d   : > { %709 = vmatpush3.bf16.msra.mxu1 %v460_v44  ;;  %710 = vmatprep.mubr.msk.bf16.mxu1 %vm903_vm0, %v902_v0 }
 0x244   : > { %711 = vmatmul.mubr.msk.bf16.vlgmr.msra.gmra.mxu1 %vm360_vm2, %v448_v46 }
 0x2fc   : > { %v414_v47 = vpop.f32.mrf.mxu1 }
 0x2fd   : > { %420 = vst [vmem:[%s280_s11] sm:$0xff] %v414_v47 }
 0x2fe   : > { %v706_v48 = vpop.f32.mrf.mxu1 }
 0x2ff   : > { %818 = shalt.err (!%p815_p2)
}
 0x300   : > { %s819_s7 = scalar_lea.hbm %s1082_s14, 128  ;;  %s823_s11 = scalar_lea.hbm %s1158_s4, 256 }
 0x301   : > { %p820_p4 = scmp.ne.s32.totalorder %s1082_s14, %s819_s7  ;;  %p824_p0 = scmp.lt.s32.totalorder %s1082_s14, %s1158_s4 }
 0x302   : > { %p825_p6 = scmp.lt.s32.totalorder %s823_s11, %s819_s7 }
 0x303   : > { %p821_p9 = pnand %p820_p4, %p1170_p13 }
 0x304   : > { %p826_p11 = por %p825_p6, %p824_p0 }
 0x305   : > { %p822_p7 = pneg %p821_p9 }
 0x307   : > { %p827_p12 = pnand %p826_p11, %p822_p7 }
 0x309   : > { %830 = shalt.err (!%p827_p12)
}
 0x30a   : > { %716 = dma.vmem_to_hbm [thread:$0]  (%p1170_p13), %s1075_s23, 128, %s1082_s14, %s504_s16   ;;  %v417_v49 = vpop.f32.mrf.mxu1 }
 0x30b   : > { %s287_s25 = scalar_lea.vmem [#allocation6], %s1038_s17  ;;  %s1113_s7 = scalar_lea.hbm %s1159_s5, %s686_s15 }
 0x30c   : > { %s535_s26 = sshll.u32 %s287_s25, 4  ;;  %v707_v50 = vpop.f32.mrf.mxu1  ;;  %s509_s9 = scalar_lea.sflag [#allocation7], %s1035_s13  ;;  %s1106_s26 = int_to_ptr.vmem [resolvable:$true] %s535_s26 }
 0x30d   : > { %s831_s23 = scalar_lea.vmem %s1106_s26, 128  ;;  %s906_s17 = smov [#allocation6]  }
 0x30e   : > { %v496_v51 = vpop.f32.mrf.mxu1  ;;  %p832_p1 = scmp.ne.s32.totalorder %s1106_s26, %s831_s23  ;;  %s835_s14 = sshll.u32 %s906_s17, 4  ;;  %s836_s14 = int_to_ptr.vmem [resolvable:$false] %s835_s14 }
 0x30f   : > { %502 = vst [vmem:[%s287_s25] sm:$0xff] %v496_v51  ;;  %s837_s22 = scalar_lea.vmem %s836_s14, 256  ;;  %p838_p8 = scmp.lt.s32.totalorder %s1106_s26, %s836_s14 }
 0x310   : > { %v712_v52 = vpop.f32.mrf.mxu1  ;;  %p833_p3 = pnand %p832_p1, %p1170_p13  ;;  %p839_p10 = scmp.lt.s32.totalorder %s837_s22, %s831_s23 }
 0x312   : > { %p834_p5 = pneg %p833_p3  ;;  %p840_p2 = por %p839_p10, %p838_p8 }
 0x314   : > { %p841_p4 = pnand %p840_p2, %p834_p5 }
 0x316   : > { %844 = shalt.err (!%p841_p4)
}
 0x317   : > { %s845_s15 = scalar_lea.hbm %s1113_s7, 128  ;;  %s849_s10 = scalar_lea.hbm %s1159_s5, 256 }
 0x318   : > { %p846_p9 = scmp.ne.s32.totalorder %s1113_s7, %s845_s15  ;;  %p850_p6 = scmp.lt.s32.totalorder %s1113_s7, %s1159_s5 }
 0x319   : > { %p851_p11 = scmp.lt.s32.totalorder %s849_s10, %s845_s15 }
 0x31a   : > { %p847_p7 = pnand %p846_p9, %p1170_p13 }
 0x31b   : > { %p852_p12 = por %p851_p11, %p850_p6 }
 0x31c   : > { %p848_p0 = pneg %p847_p7 }
 0x31e   : > { %p853_p1 = pnand %p852_p12, %p848_p0 }
 0x320   : > { %856 = shalt.err (!%p853_p1)
}
 0x321   : > { %717 = dma.vmem_to_hbm [thread:$0]  (%p1170_p13), %s1106_s26, 128, %s1113_s7, %s509_s9   ;;  %v499_v53 = vpop.f32.mrf.mxu1 }
 0x323   : > { %v713_v54 = vpop.f32.mrf.mxu1 }
 0x324 PF: > { %s547_s29 = sand.u32 1, %s887_s18   ;;  %p1171_p3 = scmp.ne.s32.totalorder %s1165_s6, 0 }
 0x325   : > { %p1172_p5 = scmp.ge.s32.totalorder %s899_s21, 2  ;;  %s548_s25 = scalar_lea.sflag [#allocation4], %s547_s29 }
 0x327   : > { %p725_p8 = pnand %p1172_p5, %p1171_p3 }
 0x329   : > { %p726_p10 = pneg %p725_p8 }
 0x32b   : > { %878 = dma.done.wait (%p726_p10), %s548_s25, 128  }
 0x32c   : > { %880 = vsyncadd (%p726_p10), %s548_s25, 4294967168  ;;  %s557_s28 = scalar_lea.sflag [#allocation7], %s547_s29 }
 0x32d   : > { %882 = dma.done.wait (%p726_p10), %s557_s28, 128  }
 0x32e   : > { %884 = vsyncadd (%p726_p10), %s557_s28, 4294967168  ;;  %p22_p13 = scmp.ge.s32.totalorder %s962_s24, 4   ;;  %s1173_s18 = smov %s891_s19 }
 0x32f   : > { %s1174_s19 = smov %s895_s20  ;;  %s1175_s20 = smov %s974_s27 }
 0x330   : > { %s1176_s21 = smov %s962_s24  ;;  %24 = sbr.rel (!%p22_p13) target bundleno = 7 (0x7), region = 107 }
 0x335   :  { %562 = vsyncpa [#allocation3], 1 }
 0x336   :  { %564 = vsyncpa [#allocation3 + $0x1], 1 }
 0x337   :  { %565 = vsyncpa [#allocation4], 1 }
 0x338   :  { %567 = vsyncpa [#allocation4 + $0x1], 1 }
 0x339   :  { %568 = vsyncpa [#allocation7], 1 }
 0x33a   :  { %570 = vsyncpa [#allocation7 + $0x1], 1 }

</bundles_post_ra>
